<compile_context>
chip_gen: v6e
topology: v6e:2x2x1
jax: 0.10.0
libtpu: 0.0.40
codegen_flags: <defaults>
</compile_context>

<pallas_src>
import jax
import jax.numpy as jnp
from jax.experimental import pallas as pl
from jax.experimental.pallas import tpu as pltpu

_MIB = 1024 * 1024
_TILE_FLOOR_BYTES = 512 * 1024   # below this per x-tile, the ~0.35us/step overhead dominates
_MIN_GRID_STEPS = 8              # pipeline depth + room for 2 TensorCores on v7x


# ---------------------------------------------------------------------------
# Kernel
# ---------------------------------------------------------------------------
def _drop_path_kernel(scale_ref, x_ref, out_ref):
    """One grid step = (block_b samples) x (row_block rows) of the folded tensor.

    scale_ref : (block_b, 1, 1)          per-sample scale in x.dtype: 0 or 1/keep_prob
    x_ref     : (block_b, row_block, C)  input tile (native dtype)
    out_ref   : (block_b, row_block, C)  output tile (same dtype)
    """
    # Single native-dtype VPU multiply with a per-sample broadcast; lane-dense
    # (C multiple of 128 on the main path) -> unmasked slab stores.
    out_ref[...] = x_ref[...] * scale_ref[...]


# ---------------------------------------------------------------------------
# Tiling policy (generation-aware)
# ---------------------------------------------------------------------------
def _physical_vmem_bytes():
    """Best-effort physical VMEM query; conservative default if unavailable."""
    try:
        info = pltpu.get_tpu_info()
        v = int(getattr(info, "vmem_capacity_bytes", 0))
        if v > 0:
            return v
    except Exception:
        pass
    return 64 * _MIB   # v7x per-TensorCore VMEM (smallest of the supported gens)


def _resident_budget_bytes(phys_vmem):
    """Budget for the 2x-in + 2x-out double-buffered x tiles.

    v5e/v6e (128 MiB physical) -> 48 MiB resident (12 MiB x-tiles);
    v7x (64 MiB physical)      -> 40 MiB resident (10 MiB x-tiles).
    """
    return min(48 * _MIB, max(16 * _MIB, phys_vmem - 24 * _MIB))


def _choose_tiles(B, R, C, itemsize, budget_bytes, min_steps=_MIN_GRID_STEPS):
    """Pick (block_b, row_block) so 4 resident x-tiles fit the budget and the grid
    has enough steps for pipelining / TensorCore sharding."""
    bytes_per_row = max(1, C * itemsize)
    tile_budget = max(budget_bytes // 4, bytes_per_row)   # one x tile (of 4 resident)
    sample_bytes = R * bytes_per_row
    lane_dense = (C % 128 == 0)

    def best_block_b(max_b):
        divisors = [d for d in range(1, B + 1) if B % d == 0 and d <= max_b]
        good = [d for d in divisors if B // d >= min_steps]
        return max(good) if good else max(divisors)

    if not lane_dense:
        # Lane-sparse fallback: block's last two dims must equal the full (R, C)
        # extents, so only the batch axis can be tiled (correct, masked stores).
        return best_block_b(max(1, tile_budget // max(1, sample_bytes))), R

    if sample_bytes <= tile_budget:
        # Whole samples per step; tile over batch.
        block_b = best_block_b(max(1, tile_budget // sample_bytes))
        row_block = R
        steps = B // block_b
        if steps < min_steps and R > 8:
            # Tiny batch: also split rows for pipeline depth / 2-TC sharding,
            # but never below the per-step-overhead floor.
            want = -(-min_steps // steps)
            cand = max(8, (R // want) // 8 * 8)
            if block_b * cand * bytes_per_row >= _TILE_FLOOR_BYTES:
                row_block = cand
        return block_b, row_block

    # One sample exceeds the tile budget: one sample per step, tile its rows
    # ((8,128)-aligned row blocks; last ragged block is handled by Pallas).
    rows_fit = max(8, (tile_budget // bytes_per_row) // 8 * 8)
    return 1, min(R, rows_fit)


# ---------------------------------------------------------------------------
# Pallas wrapper
# ---------------------------------------------------------------------------
def _drop_path_scale(x3, scale3):
    """Apply per-sample scale3 (B,1,1) to x3 (B, R, C) with a Pallas kernel."""
    B, R, C = x3.shape
    itemsize = x3.dtype.itemsize

    phys = _physical_vmem_bytes()
    budget = _resident_budget_bytes(phys)
    block_b, row_block = _choose_tiles(B, R, C, itemsize, budget)

    # 2x input + 2x output double buffers of one x tile (+15-25% headroom below).
    resident = 4 * block_b * row_block * C * itemsize
    vmem_limit = int(min(phys - 8 * _MIB,
                         max(32 * _MIB, resident * 5 // 4 + 4 * _MIB)))

    grid = (B // block_b, pl.cdiv(R, row_block))

    grid_spec = pltpu.PrefetchScalarGridSpec(
        num_scalar_prefetch=0,
        grid=grid,
        in_specs=[
            # Per-sample scale: block index is constant in j, so this tiny tile is
            # NOT re-fetched as the row axis advances.
            pl.BlockSpec((block_b, 1, 1), lambda i, j: (i, 0, 0)),
            # Lane-dense x slab (C is a multiple of 128 on the main path).
            pl.BlockSpec((block_b, row_block, C), lambda i, j: (i, j, 0)),
        ],
        out_specs=pl.BlockSpec((block_b, row_block, C), lambda i, j: (i, j, 0)),
    )

    return pl.pallas_call(
        _drop_path_kernel,
        out_shape=jax.ShapeDtypeStruct((B, R, C), x3.dtype),
        grid_spec=grid_spec,
        compiler_params=pltpu.CompilerParams(
            dimension_semantics=("parallel", "parallel"),   # all steps independent
            vmem_limit_bytes=vmem_limit,
        ),
    )(scale3, x3)


def drop_path_forward(x, drop_prob=0.0, *, training=False, key=None):
    """Pallas equivalent of torch `drop_path(x, drop_prob, training)`.

    x can have any rank >= 1 with batch as the leading axis (DeiT uses (B, N, C)).
    """
    if drop_prob == 0.0 or not training:
        # Exact PyTorch early-return: identity, no kernel launch.
        return x
    if key is None:
        raise ValueError("training-mode DropPath needs a PRNG key")

    B = x.shape[0]
    keep_prob = 1.0 - drop_prob
    # torch: random_tensor = keep_prob + rand(B,1,...,1); random_tensor.floor_()
    rand = jax.random.uniform(key, (B,), dtype=jnp.float32)
    mask = jnp.floor(keep_prob + rand)                              # {0., 1.}
    # Native-dtype scale (0 or 1/keep_prob) -> multiply stays bf16 on bf16 inputs.
    scale3 = (mask / keep_prob).astype(x.dtype).reshape(B, 1, 1)

    orig_shape = x.shape
    per_sample = 1
    for d in orig_shape[1:]:
        per_sample *= int(d)

    if per_sample % 128 == 0:
        # Lane-dense folding: the per-sample scale is invariant to how elements
        # are folded, so present a (B, per/128, 128) slab -> unmasked lane stores.
        x3 = x.reshape(B, per_sample // 128, 128)
    elif per_sample < 8 * 128:
        # Degenerate / tiny lane-sparse tensor: a padded-tile kernel launch is
        # pure overhead; one fused VPU multiply in plain JAX is the right tool.
        bshape = (B,) + (1,) * (x.ndim - 1)
        return x * scale3.reshape(bshape)
    else:
        # Lane-sparse fallback: keep full (rows, C) extents per block (masked
        # stores; correct but slower — unusual for real DeiT shapes).
        x3 = x.reshape(B, -1, orig_shape[-1])

    y3 = _drop_path_scale(x3, scale3)
    return y3.reshape(orig_shape)


# ---------------------------------------------------------------------------
# Pure-JAX reference (mirrors the PyTorch module)
# ---------------------------------------------------------------------------
def drop_path_reference(x, drop_prob, training, key):
    if drop_prob == 0.0 or not training:
        return x
    keep_prob = 1.0 - drop_prob
    B = x.shape[0]
    rand = jax.random.uniform(key, (B,), dtype=jnp.float32)
    mask = jnp.floor(keep_prob + rand)
    bshape = (B,) + (1,) * (x.ndim - 1)
    return (x / keep_prob) * mask.reshape(bshape).astype(x.dtype)


# ---------------------------------------------------------------------------
# Demo / correctness check
# ---------------------------------------------------------------------------
if __name__ == "__main__":
    drop_prob = 0.25
    keep_prob = 1.0 - drop_prob
    key = jax.random.PRNGKey(0)
    k_x, k_drop, k_x2 = jax.random.split(key, 3)

    # --- DeiT-style token tensor (B, tokens, channels), f32, lane-dense C ---
    B, N, C = 8, 16, 128
    x = jax.random.normal(k_x, (B, N, C), dtype=jnp.float32)

    # eval mode / drop_prob == 0: exact identity, no kernel launch
    assert drop_path_forward(x, drop_prob, training=False) is x
    assert drop_path_forward(x, 0.0, training=True, key=k_drop) is x

    y = jax.block_until_ready(drop_path_forward(x, drop_prob, training=True, key=k_drop))
    y_ref = drop_path_reference(x, drop_prob, True, k_drop)
    assert y.shape == x.shape and y.dtype == x.dtype
    assert jnp.allclose(y, y_ref, atol=1e-6, rtol=1e-6), "f32 output mismatch"

    # each sample is either all-zero or exactly x / keep_prob
    kept = jnp.all(jnp.isclose(y.reshape(B, -1), (x / keep_prob).reshape(B, -1),
                               atol=1e-6, rtol=1e-6), axis=1)
    dropped = jnp.all(y.reshape(B, -1) == 0.0, axis=1)
    assert bool(jnp.all(kept | dropped))

    # --- bf16 data path (native-dtype multiply inside the kernel) ---
    x_bf16 = x.astype(jnp.bfloat16)
    y_bf16 = jax.block_until_ready(
        drop_path_forward(x_bf16, drop_prob, training=True, key=k_drop))
    y_bf16_ref = drop_path_reference(x_bf16, drop_prob, True, k_drop)
    assert y_bf16.dtype == jnp.bfloat16
    assert jnp.allclose(y_bf16.astype(jnp.float32),
                        y_bf16_ref.astype(jnp.float32), atol=2e-2, rtol=2e-2), \
        "bf16 output mismatch"

    # --- lane-sparse channel dim (C=192) refolded to a lane-dense (B, N*C/128, 128) slab ---
    x192 = jax.random.normal(k_x2, (B, N, 192), dtype=jnp.float32)
    y192 = jax.block_until_ready(
        drop_path_forward(x192, drop_prob, training=True, key=k_drop))
    y192_ref = drop_path_reference(x192, drop_prob, True, k_drop)
    assert y192.shape == x192.shape
    assert jnp.allclose(y192, y192_ref, atol=1e-6, rtol=1e-6), "C=192 output mismatch"

    print("KERNEL_OK")
</pallas_src>

<mosaic_0001>
module attributes {stable_mosaic.version = 11 : i64} {
  func.func @_drop_path_kernel(%arg0: i32, %arg1: i32, %arg2: memref<1x1x1xf32, #tpu.memory_space<vmem>>, %arg3: memref<1x16x128xf32, #tpu.memory_space<vmem>>, %arg4: memref<1x16x128xf32, #tpu.memory_space<vmem>>) attributes {dimension_semantics = [#tpu.dimension_semantics<parallel>, #tpu.dimension_semantics<parallel>], iteration_bounds = array<i64: 8, 1>, scalar_prefetch = 0 : i64, scratch_operands = 0 : i64, tpu.core_type = #tpu.core_type<tc>, window_params = [{transform_indices = @transform_0, window_bounds = array<i64: 1, 1, 1>}, {transform_indices = @transform_1, window_bounds = array<i64: 1, 16, 128>}, {transform_indices = @transform_2, window_bounds = array<i64: 1, 16, 128>}]} {
    %c0 = arith.constant 0 : index
    %c0_0 = arith.constant 0 : index
    %c0_1 = arith.constant 0 : index
    %0 = vector.load %arg3[%c0, %c0_0, %c0_1] : memref<1x16x128xf32, #tpu.memory_space<vmem>>, vector<1x16x128xf32>
    %c0_2 = arith.constant 0 : index
    %c0_3 = arith.constant 0 : index
    %c0_4 = arith.constant 0 : index
    %1 = vector.load %arg2[%c0_2, %c0_3, %c0_4] : memref<1x1x1xf32, #tpu.memory_space<vmem>>, vector<1x1x1xf32>
    %2 = vector.broadcast %1 : vector<1x1x1xf32> to vector<1x16x128xf32>
    %3 = arith.mulf %0, %2 : vector<1x16x128xf32>
    %c0_5 = arith.constant 0 : index
    %c0_6 = arith.constant 0 : index
    %c0_7 = arith.constant 0 : index
    %4 = vector.load %arg4[%c0_5, %c0_6, %c0_7] : memref<1x16x128xf32, #tpu.memory_space<vmem>>, vector<1x16x128xf32>
    tpu.vector_store %arg4[%c0_5, %c0_6, %c0_7], %3 {strides = array<i32>} : memref<1x16x128xf32, #tpu.memory_space<vmem>>, vector<1x16x128xf32>,
    return
  }
  func.func @transform_0(%arg0: i32, %arg1: i32) -> (i32, i32, i32) {
    %c0_i32 = arith.constant 0 : i32
    %c0_i32_0 = arith.constant 0 : i32
    %c0_i32_1 = arith.constant 0 : i32
    return %arg0, %c0_i32, %c0_i32_0 : i32, i32, i32
  }
  func.func @transform_1(%arg0: i32, %arg1: i32) -> (i32, i32, i32) {
    %c0_i32 = arith.constant 0 : i32
    %c0_i32_0 = arith.constant 0 : i32
    return %arg0, %arg1, %c0_i32 : i32, i32, i32
  }
  func.func @transform_2(%arg0: i32, %arg1: i32) -> (i32, i32, i32) {
    %c0_i32 = arith.constant 0 : i32
    %c0_i32_0 = arith.constant 0 : i32
    return %arg0, %arg1, %c0_i32 : i32, i32, i32
  }
}

</mosaic_0001>

<bundles_post_ra>
// kernel: tpu_custom_call.1
= control target key start
LH: loop header
LB: loop body
LE: loop exit
PB: predicated region body
PF: predicated region fallthrough
CT: control target
= control target key end

     0   :  { %7 = vsyncpa [#allocation3], 0  ;;  %s691_s0 = inlined_call_operand.vmem [shape: f32[8,1,1], index: 0, kind: input, shape index: {}]   ;;  %s692_s1 = inlined_call_operand.hbm [shape: f32[8,16,128], index: 1, kind: input, shape index: {}]   ;;  %s693_s2 = inlined_call_operand.hbm [shape: f32[8,16,128], index: 2, kind: output, shape index: {}]  }
   0x1   :  { %9 = vsyncpa [#allocation3 + $0x1], 0 }
   0x2   :  { %10 = vsyncpa [#allocation4], 0 }
   0x3   :  { %12 = vsyncpa [#allocation4 + $0x1], 0  ;;  %s542_s9 = smov 0   ;;  %s544_s10 = smov 0  }
   0x4   :  { %s546_s11 = smov 0   ;;  %s548_s12 = smov 0  }
   0x5   :  { %s550_s13 = smov 0   ;;  %s552_s14 = smov 0  }
   0x6 LB: > { %s324_s15 = sadd.s32 4294967295, %s518_s14   ;;  %s325_s16 = sadd.s32 4294967294, %s518_s14   ;;  %s518_s14 = sphi %s552_s14, %s18_s14   ;;  %s514_s13 = sphi %s550_s13, %s703_s13   ;;  %s510_s12 = sphi %s548_s12, %s702_s12   ;;  %s506_s11 = sphi %s546_s11, %s701_s11   ;;  %s502_s10 = sphi %s544_s10, %s700_s10   ;;  %s498_s9 = sphi %s542_s9, %s699_s9  }
   0x7   : > { %s30_s17 = sadd.s32 1, %s514_s13  ;;  %s65_s18 = sadd.s32 1, %s506_s11 }
   0x8   : > { %p32_p0 = scmp.ge.s32.totalorder %s30_s17, 8  ;;  %p72_p1 = scmp.ne.s32.totalorder %s506_s11, %s502_s10 }
   0x9   : > { %p73_p2 = scmp.eq.s32.totalorder %s518_s14, 0  ;;  %p78_p3 = scmp.ne.s32.totalorder %s502_s10, %s498_s9 }
   0xa   : > { %s705_s17 = smov (%p32_p0, %s30_s17), 0  ;;  %p79_p5 = scmp.eq.s32.totalorder %s324_s15, 0 }
   0xb   : > { %p583_p4 = por %p73_p2, %p72_p1  ;;  %s60_s20 = ssub.s32 %s514_s13, %s705_s17 }
   0xc   : > { %p104_p6 = scmp.eq.s32.totalorder %s324_s15, 7  ;;  %p63_p7 = scmp.eq.s32.totalorder %s60_s20, 0 }
   0xd   : > { %p589_p8 = por %p79_p5, %p78_p3  ;;  %p110_p10 = scmp.eq.s32.totalorder %s325_s16, 7 }
   0xe   : > { %p593_p9 = por %p104_p6, %p72_p1  ;;  %p354_p12 = scmp.lt.s32.totalorder %s518_s14, 8 }
   0xf   : > { %s598_s23 = scalar_select %p63_p7, %s506_s11, %s65_s18  }
  0x10   : > { %p600_p11 = por %p110_p10, %p78_p3  ;;  %s136_s25 = sand.u32 1, %s506_s11  }
  0x11   : > { %s328_s26 = sshll.u32 %s136_s25, 4  ;;  %s340_s27 = sshll.u32 %s514_s13, 8 }
  0x12   : > { %s148_s30 = scalar_lea.hbm %s692_s1, %s340_s27  ;;  %s140_s3 = scalar_lea.vmem [#allocation2], %s328_s26 }
  0x13   : > { %s149_s4 = sshll.u32 %s140_s3, 4  ;;  %p612_p13 = pnand %p354_p12, %p583_p4  ;;  %s150_s4 = int_to_ptr.vmem [resolvable:$true] %s149_s4 }
  0x14   : > { %p331_p0 = scmp.ge.s32.totalorder %s518_s14, 1  ;;  %s137_s6 = scalar_lea.sflag [#allocation3], %s136_s25 }
  0x15   : > { %p412_p1 = pneg %p612_p13  ;;  %s423_s7 = scalar_lea.vmem %s150_s4, 256 }
  0x16   : > { %p424_p2 = scmp.ne.s32.totalorder %s150_s4, %s423_s7  ;;  %s520_s8 = smov [#allocation2]  }
  0x17   : > { %s428_s15 = sshll.u32 %s520_s8, 4  ;;  %s429_s15 = int_to_ptr.vmem [resolvable:$false] %s428_s15 }
  0x18   : > { %p426_p3 = pnand %p424_p2, %p412_p1  ;;  %s430_s16 = scalar_lea.vmem %s429_s15, 512 }
  0x19   : > { %p431_p6 = scmp.lt.s32.totalorder %s150_s4, %s429_s15  ;;  %p432_p7 = scmp.lt.s32.totalorder %s430_s16, %s423_s7 }
  0x1a   : > { %p427_p5 = pneg %p426_p3 }
  0x1b   : > { %p433_p10 = por %p432_p7, %p431_p6 }
  0x1d   : > { %p434_p4 = pnand %p433_p10, %p427_p5 }
  0x1f   : > { %437 = shalt.err (!%p434_p4)
}
  0x20   : > { %s521_s18 = smov 128   ;;  %s522_s19 = smov 8  }
  0x21   : > { %349 = dma.hbm_to_vmem [thread:$0]  (!%p612_p13), %s148_s30, 256, %s150_s4, %s137_s6, %s521_s18, %s521_s18, %s522_s19  }
  0x22   : > { %p157_p12 = scmp.lt.s32.totalorder %s518_s14, 9 }
  0x24   : > { %p158_p1 = pnand %p331_p0, %p157_p12 }
  0x25   : > { %s625_s20 = sand.u32 (!%p158_p1), 1, %s502_s10  }
  0x26   : > { %161 = sbr.rel (%p158_p1) target bundleno = 190 (0xbe), region = 28  ;;  %s332_s25 = sshll.u32 (!%p158_p1), %s625_s20, 4 }
  0x27   : > { %s164_s26 = scalar_lea.sflag (!%p158_p1), [#allocation3], %s625_s20  ;;  %s167_s27 = scalar_lea.vmem (!%p158_p1), [#allocation2], %s332_s25 }
  0x2b   : > { %489 = dma.done.wait (%p589_p8), %s164_s26, 256  }
  0x2c   : > { %491 = vsyncadd (%p589_p8), %s164_s26, 4294967040  ;;  %p191_p13 = scmp.lt.s32.totalorder %s510_s12, 7  ;;  %v523_v0 = vmov 0   ;;  %s190_s4 = scalar_lea.vmem [#allocation5], %s332_s25  ;;  %v196_v2 = vld [vmem:[%s167_s27] sm:$0xff]  ;;  %v197_v3 = vld [vmem:[%s167_s27 + $0x8] sm:$0xff] }
  0x2d   : > { %409 = vset.pattern.permute.xlu0 %v523_v0  ;;  %s228_s5 = sshll.u32 %s190_s4, 4  ;;  %s341_s6 = sshll.u32 %s510_s12, 8  ;;  %s639_s5 = int_to_ptr.vmem [resolvable:$true] %s228_s5 }
  0x2e   : > { %s192_s28 = scalar_select %p191_p13, %s510_s12, 7 }
  0x2f   : > { %s644_s8 = scalar_lea.hbm %s693_s2, %s341_s6  ;;  %s213_s15 = scalar_lea.sflag [#allocation4], %s625_s20 }
  0x30   : > { %s193_s3 = scalar_lea.vmem %s691_s0, %s192_s28  ;;  %s438_s16 = scalar_lea.vmem %s639_s5, 256 }
  0x31   : > { %v334_v1 = vld [vmem:[%s193_s3] ss:$0 sm:$0xff]  ;;  %p439_p8 = scmp.ne.s32.totalorder %s639_s5, %s438_s16  ;;  %s524_s12 = smov [#allocation5]  }
  0x32   : > { %205 = vperm.xlu0 %409, %v334_v1   ;;  %s442_s18 = sshll.u32 %s524_s12, 4  ;;  %s443_s18 = int_to_ptr.vmem [resolvable:$false] %s442_s18 }
  0x33   : > { %p440_p0 = pnand %p439_p8, %p593_p9  ;;  %s444_s19 = scalar_lea.vmem %s443_s18, 512 }
  0x34   : > { %p445_p3 = scmp.lt.s32.totalorder %s639_s5, %s443_s18  ;;  %p446_p5 = scmp.lt.s32.totalorder %s444_s19, %s438_s16 }
  0x35   : > { %p441_p2 = pneg %p440_p0 }
  0x36   : > { %p447_p6 = por %p446_p5, %p445_p3 }
  0x38   : > { %p448_p7 = pnand %p447_p6, %p441_p2 }
  0xad   : > { %v206_v4 = vpop.permute.xlu0 %205 }
  0xae   : > { %v208_v5 = vmul.f32 %v206_v4, %v196_v2  ;;  %v209_v6 = vmul.f32 %v206_v4, %v197_v3 }
  0xb0   : > { %210 = vst [vmem:[%s190_s4] sm:$0xff] %v208_v5  ;;  %211 = vst [vmem:[%s190_s4 + $0x8] sm:$0xff] %v209_v6 }
  0xb1   : > { %451 = shalt.err (!%p448_p7)
}
  0xb2   : > { %s452_s25 = scalar_lea.hbm %s644_s8, 256  ;;  %s456_s28 = scalar_lea.hbm %s693_s2, 2048 }
  0xb3   : > { %p453_p10 = scmp.ne.s32.totalorder %s644_s8, %s452_s25  ;;  %p457_p1 = scmp.lt.s32.totalorder %s644_s8, %s693_s2 }
  0xb4   : > { %p458_p13 = scmp.lt.s32.totalorder %s456_s28, %s452_s25 }
  0xb5   : > { %p454_p4 = pnand %p453_p10, %p593_p9 }
  0xb6   : > { %p459_p8 = por %p458_p13, %p457_p1 }
  0xb7   : > { %p455_p12 = pneg %p454_p4 }
  0xb9   : > { %p460_p0 = pnand %p459_p8, %p455_p12 }
  0xbb   : > { %463 = shalt.err (!%p460_p0)
}
  0xbc   : > { %s525_s3 = smov 128   ;;  %s526_s4 = smov 8  }
  0xbd   : > { %344 = dma.vmem_to_hbm [thread:$0]  (%p593_p9), %s639_s5, 256, %s644_s8, %s213_s15, %s525_s3, %s525_s3, %s526_s4  }
  0xbe PF: > { %p355_p2 = scmp.ge.s32.totalorder %s518_s14, 2  ;;  %s243_s6 = sand.u32 1, %s498_s9  }
  0xbf   : > { %s244_s21 = scalar_lea.sflag [#allocation4], %s243_s6 }
  0xc0   : > { %p351_p3 = pnand %p355_p2, %p600_p11 }
  0xc2   : > { %p352_p5 = pneg %p351_p3 }
  0xc4   : > { %493 = dma.done.wait (%p352_p5), %s244_s21, 256  }
  0xc5   : > { %495 = vsyncadd (%p352_p5), %s244_s21, 4294967040  ;;  %s18_s14 = sadd.s32 1, %s518_s14   ;;  %s699_s9 = smov %s502_s10 }
  0xc6   : > { %p15_p6 = scmp.ge.s32.totalorder %s18_s14, 10   ;;  %s700_s10 = smov %s506_s11 }
  0xc7   : > { %s701_s11 = smov %s598_s23  ;;  %s702_s12 = smov %s514_s13 }
  0xc8   : > { %s703_s13 = smov %s705_s17  ;;  %17 = sbr.rel (!%p15_p6) target bundleno = 6 (0x6), region = 76 }
  0xcd   :  { %249 = vsyncpa [#allocation3], 1 }
  0xce   :  { %251 = vsyncpa [#allocation3 + $0x1], 1 }
  0xcf   :  { %252 = vsyncpa [#allocation4], 1 }
  0xd0   :  { %254 = vsyncpa [#allocation4 + $0x1], 1 }

</bundles_post_ra>
